<compile_context>
chip_gen: v7x
topology: tpu7x:2x2x1
jax: 0.10.0
libtpu: 0.0.40
codegen_flags: <defaults>
</compile_context>

<pallas_src>
import functools
import numpy as np
import jax
import jax.numpy as jnp
from jax.experimental import pallas as pl
from jax.experimental.pallas import tpu as pltpu


# ---------------------- Kernel A: per-view, NumX-normalised weights ----------------------

def _view_weight_kernel(w2p_ref, xyz_ref, wt_ref, *, NV, Hf, Wf, img_w, img_h):
    """Whole-volume (tiny) kernel.  Layout [NumX (sublanes), NumY*NumZ (lanes)] so torch's
       `mask / (sum(mask, dim=NumX) + 1e-8)` is a cheap cross-sublane reduce."""
    X = xyz_ref[0]                                          # [NumX, YZ]
    Y = xyz_ref[1]
    Z = xyz_ref[2]
    # torch: gx = (px/pz)/w - 1 ; ix = (gx+1)*0.5*(Wf-1)  ->  ix = (px/pz) * sx
    sx = 0.5 * (Wf - 1.0) / img_w
    sy = 0.5 * (Hf - 1.0) / img_h
    for v in range(NV):
        def w2p(i, j, _v=v):
            return w2p_ref[_v * 12 + i * 4 + j]             # SMEM scalar read

        px = w2p(0, 0) * X + w2p(0, 1) * Y + w2p(0, 2) * Z + w2p(0, 3)
        py = w2p(1, 0) * X + w2p(1, 1) * Y + w2p(1, 2) * Z + w2p(1, 3)
        pz = w2p(2, 0) * X + w2p(2, 1) * Y + w2p(2, 2) * Z + w2p(2, 3)

        valid_depth = pz > 0.0
        inv_pz = pl.reciprocal(jnp.where(valid_depth, pz, 1.0))   # guarded, one recip
        ix = px * inv_pz * sx
        iy = py * inv_pz * sy

        in_bounds = (ix >= 0.0) & (ix <= Wf - 1.0) & (iy >= 0.0) & (iy <= Hf - 1.0)
        mask = jnp.where(in_bounds & valid_depth, 1.0, 0.0)       # [NumX, YZ]
        denom = jnp.sum(mask, axis=0, keepdims=True)              # sum over NumX
        wt_ref[v] = mask * pl.reciprocal(denom + 1e-8)


# ---------------------- Kernel B: per-voxel-tile feature fusion ----------------------

def _fuse_tile_kernel(w2p_ref, xyz_ref, wt_ref, feat_ref, out_ref, *,
                      NV, C, Hf, Wf, img_w, img_h):
    """One voxel tile (Mt voxels on the lane axis):
       1) projection via SMEM-scalar FMAs on the VPU,
       2) bilinear grid_sample as feat[C,P] @ wmat[P,Mt] where wmat is built separably
          from Ry[Hf,Mt] (x) Rx[Wf,Mt] one-hots (exactly equivalent to the 4-corner sum,
          clamped duplicate corners still add up),
       3) streaming masked mean/var accumulators over views."""
    mt = out_ref.shape[1]
    P = Hf * Wf

    Xc = xyz_ref[0:1, :]                                    # [1, Mt]
    Yc = xyz_ref[1:2, :]
    Zc = xyz_ref[2:3, :]
    iota_h = jax.lax.broadcasted_iota(jnp.int32, (Hf, mt), 0)
    iota_w = jax.lax.broadcasted_iota(jnp.int32, (Wf, mt), 0)
    sx = 0.5 * (Wf - 1.0) / img_w
    sy = 0.5 * (Hf - 1.0) / img_h

    s0 = jnp.zeros((1, mt), jnp.float32)      # sum_v w
    s1 = jnp.zeros((C, mt), jnp.float32)      # sum_v w * s
    s2 = jnp.zeros((C, mt), jnp.float32)      # sum_v w * s^2

    # TODO(synk): for production view counts (NV >= 6) switch this to lax.fori_loop to
    # bound vreg live ranges; at NV=2 the unrolled Python loop is cheaper.
    for v in range(NV):
        def w2p(i, j, _v=v):
            return w2p_ref[_v * 12 + i * 4 + j]             # SMEM scalar read

        px = w2p(0, 0) * Xc + w2p(0, 1) * Yc + w2p(0, 2) * Zc + w2p(0, 3)
        py = w2p(1, 0) * Xc + w2p(1, 1) * Yc + w2p(1, 2) * Zc + w2p(1, 3)
        pz = w2p(2, 0) * Xc + w2p(2, 1) * Yc + w2p(2, 2) * Zc + w2p(2, 3)

        inv_pz = pl.reciprocal(jnp.where(pz > 0.0, pz, 1.0))      # guarded divide
        ix = px * inv_pz * sx                                      # [1, Mt]
        iy = py * inv_pz * sy

        ix_f = jnp.floor(ix)
        iy_f = jnp.floor(iy)
        fx = ix - ix_f
        fy = iy - iy_f
        ix0 = jnp.clip(ix_f, 0.0, Wf - 1.0).astype(jnp.int32)
        ix1 = jnp.clip(ix_f + 1.0, 0.0, Wf - 1.0).astype(jnp.int32)
        iy0 = jnp.clip(iy_f, 0.0, Hf - 1.0).astype(jnp.int32)
        iy1 = jnp.clip(iy_f + 1.0, 0.0, Hf - 1.0).astype(jnp.int32)

        # separable bilinear one-hots: 2 nonzeros per column each
        rx = (jnp.where(iota_w == ix0, 1.0 - fx, 0.0) +
              jnp.where(iota_w == ix1, fx, 0.0))                   # [Wf, Mt]
        ry = (jnp.where(iota_h == iy0, 1.0 - fy, 0.0) +
              jnp.where(iota_h == iy1, fy, 0.0))                   # [Hf, Mt]
        # per-column outer product -> combined gather matrix (f32 collapse is layout-free,
        # then one cast pass to bf16 for the MXU)
        wmat = (ry[:, None, :] * rx[None, :, :]).reshape(P, mt).astype(jnp.bfloat16)

        samp = jnp.dot(feat_ref[v], wmat,
                       preferred_element_type=jnp.float32)         # [C, Mt] f32

        w_v = wt_ref[v:v + 1, :]                                   # [1, Mt]
        ws = w_v * samp
        s0 = s0 + w_v
        s1 = s1 + ws
        s2 = s2 + ws * samp

    mean = s1                                                      # torch: sum_v w*s
    var = s2 - 2.0 * mean * s1 + (mean * mean) * s0                # == sum_v w*(s-mean)^2
    out_ref[0:C, :] = mean
    out_ref[C:2 * C, :] = var


# ---------------------- Kernel C: 1x1x1 conv (channels-major matmul, tiled over M) ----------

def _pointwise_conv_kernel(x_ref, w_ref, b_ref, o_ref):
    # x: [Cin, Mt], w: [Cout, Cin], b: [Cout, 1] -> o: [Cout, Mt] (lane-dense output)
    o_ref[...] = (jnp.dot(w_ref[...], x_ref[...],
                          preferred_element_type=jnp.float32) + b_ref[...])


# ------------------------------------ wrappers ------------------------------------

def _pick_m_tile(M):
    # largest lane-aligned tile that still yields >= 2 grid steps (keeps both v7x TCs busy
    # and the pipeline fed); fall back to the whole (small) axis otherwise.
    # TODO(synk): at production resolutions make this VMEM-budget aware (wmat ~ P*Mt*4 B live,
    # roughly half the tile on v7x's 64 MiB vs v6e's 128 MiB).
    for t in (1024, 512, 256, 128):
        if M % t == 0 and M // t >= 2:
            return t
    return M


def compute_view_weights(w2p_flat, xyz_3d, *, img_w, img_h, Hf, Wf, NV):
    _, NX, YZ = xyz_3d.shape
    kernel = functools.partial(_view_weight_kernel, NV=NV, Hf=Hf, Wf=Wf,
                               img_w=float(img_w), img_h=float(img_h))
    return pl.pallas_call(
        kernel,
        out_shape=jax.ShapeDtypeStruct((NV, NX, YZ), jnp.float32),
        in_specs=[
            pl.BlockSpec(memory_space=pltpu.MemorySpace.SMEM),   # w2pixel flat scalars
            pl.BlockSpec(memory_space=pltpu.MemorySpace.VMEM),   # xyz [3, NumX, YZ]
        ],
        out_specs=pl.BlockSpec(memory_space=pltpu.MemorySpace.VMEM),
    )(w2p_flat, xyz_3d)


def fuse_level(w2p_flat, xyz_level, feat, *, img_w, img_h):
    NV, C, Hf, Wf = feat.shape
    _, X, Y, Z = xyz_level.shape
    YZ, P = Y * Z, Hf * Wf
    M = X * YZ

    # per-view weights (mask normalised over NumX) — tiny whole-volume kernel.
    # TODO(synk): at production NV/resolution, emit only the [NV, YZ] denominator and
    # recompute the mask inside the fusion kernel to drop this HBM round-trip.
    wt = compute_view_weights(w2p_flat, xyz_level.reshape(3, X, YZ),
                              img_w=img_w, img_h=img_h, Hf=Hf, Wf=Wf, NV=NV)
    wt_flat = wt.reshape(NV, M)                                    # x-major flat order

    xyz_flat = xyz_level.reshape(3, M)                             # [3, M]
    feat_flat = feat.reshape(NV, C, P).astype(jnp.bfloat16)        # bf16 MXU operand

    mt = _pick_m_tile(M)
    kernel = functools.partial(_fuse_tile_kernel, NV=NV, C=C, Hf=Hf, Wf=Wf,
                               img_w=float(img_w), img_h=float(img_h))
    return pl.pallas_call(
        kernel,
        out_shape=jax.ShapeDtypeStruct((2 * C, M), jnp.float32),
        grid=(M // mt,),
        in_specs=[
            pl.BlockSpec(memory_space=pltpu.MemorySpace.SMEM),   # w2pixel scalars (SMEM)
            pl.BlockSpec((3, mt), lambda t: (0, t)),             # voxel coords (lane-tiled)
            pl.BlockSpec((NV, mt), lambda t: (0, t)),            # per-view weights (tiled)
            # grid-invariant features; TODO(synk): pipeline_mode=pl.Buffered(1) at large P
            pl.BlockSpec((NV, C, P), lambda t: (0, 0, 0)),
        ],
        out_specs=pl.BlockSpec((2 * C, mt), lambda t: (0, t)),   # [mean|var], lane-dense
        compiler_params=pltpu.CompilerParams(
            dimension_semantics=("parallel",)),
    )(w2p_flat, xyz_flat, wt_flat, feat_flat)


def pointwise_conv(x_cm, w_t, b_col):
    cout, cin = w_t.shape
    m = x_cm.shape[1]
    mt = _pick_m_tile(m)
    return pl.pallas_call(
        _pointwise_conv_kernel,
        out_shape=jax.ShapeDtypeStruct((cout, m), jnp.float32),
        grid=(m // mt,),
        in_specs=[
            pl.BlockSpec((cin, mt), lambda t: (0, t)),
            pl.BlockSpec((cout, cin), lambda t: (0, 0)),
            pl.BlockSpec((cout, 1), lambda t: (0, 0)),
        ],
        out_specs=pl.BlockSpec((cout, mt), lambda t: (0, t)),
        compiler_params=pltpu.CompilerParams(dimension_semantics=("parallel",)),
    )(x_cm, w_t, b_col)


class MultiScaleFeatureVolumePallas:
    """JAX/Pallas port of MultiScaleFeatureVolume.forward."""

    def __init__(self, cfg, feat_channels, decoder_out=32):
        self.volume_reso = cfg['volume_resolution']
        self.volume_size = cfg['volume_size']
        self.voxel_size = self.volume_size / self.volume_reso
        self.half = self.voxel_size / 2
        self.multilevel = 3
        line = (np.linspace(0, self.volume_reso - 1, self.volume_reso)
                * self.voxel_size + self.half)
        x, y, z = np.meshgrid(line, line, line, indexing='ij')
        self.xyz = []
        for i in range(self.multilevel):
            s = 2 ** i
            self.xyz.append(np.stack(
                [x[::s, ::s, ::s], y[::s, ::s, ::s], z[::s, ::s, ::s]]))

        # TODO(synk): Volume3DDecoder definition is not provided in the reference file;
        # deterministic stand-in (nearest upsample + channel concat + 1x1x1 conv via Pallas).
        c_total = int(sum(2 * c for c in feat_channels))
        kw, kb = jax.random.split(jax.random.PRNGKey(1))
        self.dec_w_t = (jax.random.normal(kw, (decoder_out, c_total), jnp.float32)
                        * (1.0 / np.sqrt(c_total)))
        self.dec_b = jax.random.normal(kb, (decoder_out, 1), jnp.float32) * 0.01

    def forward(self, feats, ref_poses, Ks, bbox, img_shape):
        h, w = img_shape[-2], img_shape[-1]
        NV = feats[0].shape[0]

        ref_poses_h = jnp.tile(jnp.eye(4, dtype=jnp.float32), (NV, 1, 1))
        ref_poses_h = ref_poses_h.at[:, :3, :4].set(ref_poses.astype(jnp.float32))
        intrinsics_pad = jnp.tile(jnp.eye(4, dtype=jnp.float32), (NV, 1, 1))
        intrinsics_pad = intrinsics_pad.at[:, :3, :3].set(Ks.astype(jnp.float32))
        w2pixel = jnp.einsum('nij,njk->nik', intrinsics_pad, ref_poses_h)   # [NV,4,4]
        w2p_flat = w2pixel[:, :3, :4].reshape(-1).astype(jnp.float32)       # [NV*12] SMEM

        bbox0 = jnp.asarray(bbox[0], jnp.float32)

        vols = []
        for i in range(len(feats)):
            xyz_i = jnp.asarray(self.xyz[i], jnp.float32) + bbox0[:, None, None, None]
            _, Xi, Yi, Zi = xyz_i.shape
            feat = feats[i].astype(jnp.float32)
            C = feat.shape[1]
            out = fuse_level(w2p_flat, xyz_i, feat, img_w=w, img_h=h)       # [2C, M]
            vol = out.reshape(2 * C, Xi, Yi, Zi)
            vol = jnp.transpose(vol, (0, 3, 2, 1))[None]                    # [1, 2C, Z, Y, X]
            vols.append(vol)

        return self._volume_regularization(vols)

    def _volume_regularization(self, vols):
        # TODO(synk): at production resolutions fuse the nearest upsample into the conv's
        # BlockSpec index_maps (per-level coarse tiles) instead of materialising it in HBM.
        ups = [vols[0]]
        for i in range(1, len(vols)):
            r = 2 ** i
            v = vols[i]
            v = jnp.repeat(jnp.repeat(jnp.repeat(v, r, axis=2), r, axis=3), r, axis=4)
            ups.append(v)
        fused = jnp.concatenate(ups, axis=1)                                # [1, Ctot, Z, Y, X]
        _, ctot, Zd, Yd, Xd = fused.shape
        x_cm = fused.reshape(ctot, Zd * Yd * Xd)                            # channels-major
        y_cm = pointwise_conv(x_cm, self.dec_w_t, self.dec_b)              # [Cout, M]
        cout = y_cm.shape[0]
        return y_cm.reshape(1, cout, Zd, Yd, Xd)


# ----------------------------------- main -----------------------------------

if __name__ == "__main__":
    cfg = {'volume_resolution': 8, 'volume_size': 0.3}
    NV = 2
    feat_channels = [8, 16, 32]
    img_shape = (3, 64, 64)                       # img_shape[-2:] = (H, W) = (64, 64)

    key = jax.random.PRNGKey(0)
    k0, k1, k2 = jax.random.split(key, 3)
    feats = [
        jax.random.normal(k0, (NV, feat_channels[0], 16, 16), jnp.float32),
        jax.random.normal(k1, (NV, feat_channels[1], 8, 8), jnp.float32),
        jax.random.normal(k2, (NV, feat_channels[2], 8, 8), jnp.float32),
    ]

    # Deterministic world-to-camera poses [NV, 3, 4]: cameras looking at the volume.
    def roty(a):
        c, s = np.cos(a), np.sin(a)
        return np.array([[c, 0, s], [0, 1, 0], [-s, 0, c]], dtype=np.float32)

    poses = []
    for v_i, ang in enumerate([0.0, 0.1]):
        R = roty(ang)
        t = np.array([0.02 * v_i, 0.0, 0.5], dtype=np.float32)
        poses.append(np.concatenate([R, t[:, None]], axis=1))
    ref_poses = jnp.asarray(np.stack(poses, axis=0))                 # [NV, 3, 4]

    K = np.array([[50.0, 0.0, 32.0],
                  [0.0, 50.0, 32.0],
                  [0.0, 0.0, 1.0]], dtype=np.float32)
    Ks = jnp.asarray(np.stack([K] * NV, axis=0))                     # [NV, 3, 3]

    bbox = np.array([[-0.15, -0.15, -0.15],
                     [0.15, 0.15, 0.15]], dtype=np.float32)

    module = MultiScaleFeatureVolumePallas(cfg, feat_channels, decoder_out=32)
    out = module.forward(feats, ref_poses, Ks, bbox, img_shape)
    out = jax.block_until_ready(out)

    assert out.shape == (1, 32, 8, 8, 8), out.shape
    assert bool(jnp.all(jnp.isfinite(out)))
    print("KERNEL_OK")
</pallas_src>

<mosaic_0001>
module attributes {stable_mosaic.version = 11 : i64} {
  func.func @_view_weight_kernel(%arg0: memref<24xf32, #tpu.memory_space<smem>>, %arg1: memref<3x8x64xf32, #tpu.memory_space<vmem>>, %arg2: memref<2x8x64xf32, #tpu.memory_space<vmem>>) attributes {dimension_semantics = [], scalar_prefetch = 0 : i64, scratch_operands = 0 : i64, tpu.core_type = #tpu.core_type<tc>} {
    %c0 = arith.constant 0 : index
    %c0_0 = arith.constant 0 : index
    %c0_1 = arith.constant 0 : index
    %0 = vector.load %arg1[%c0, %c0_0, %c0_1] : memref<3x8x64xf32, #tpu.memory_space<vmem>>, vector<1x8x64xf32>
    %1 = vector.shape_cast %0 : vector<1x8x64xf32> to vector<8x64xf32>
    %c1 = arith.constant 1 : index
    %c0_2 = arith.constant 0 : index
    %c0_3 = arith.constant 0 : index
    %2 = vector.load %arg1[%c1, %c0_2, %c0_3] : memref<3x8x64xf32, #tpu.memory_space<vmem>>, vector<1x8x64xf32>
    %3 = vector.shape_cast %2 : vector<1x8x64xf32> to vector<8x64xf32>
    %c2 = arith.constant 2 : index
    %c0_4 = arith.constant 0 : index
    %c0_5 = arith.constant 0 : index
    %4 = vector.load %arg1[%c2, %c0_4, %c0_5] : memref<3x8x64xf32, #tpu.memory_space<vmem>>, vector<1x8x64xf32>
    %5 = vector.shape_cast %4 : vector<1x8x64xf32> to vector<8x64xf32>
    %c0_6 = arith.constant 0 : index
    %6 = memref.load %arg0[%c0_6] : memref<24xf32, #tpu.memory_space<smem>>
    %7 = vector.broadcast %6 : f32 to vector<8x64xf32>
    %8 = arith.mulf %7, %1 : vector<8x64xf32>
    %c1_7 = arith.constant 1 : index
    %9 = memref.load %arg0[%c1_7] : memref<24xf32, #tpu.memory_space<smem>>
    %10 = vector.broadcast %9 : f32 to vector<8x64xf32>
    %11 = arith.mulf %10, %3 : vector<8x64xf32>
    %12 = arith.addf %8, %11 : vector<8x64xf32>
    %c2_8 = arith.constant 2 : index
    %13 = memref.load %arg0[%c2_8] : memref<24xf32, #tpu.memory_space<smem>>
    %14 = vector.broadcast %13 : f32 to vector<8x64xf32>
    %15 = arith.mulf %14, %5 : vector<8x64xf32>
    %16 = arith.addf %12, %15 : vector<8x64xf32>
    %c3 = arith.constant 3 : index
    %17 = memref.load %arg0[%c3] : memref<24xf32, #tpu.memory_space<smem>>
    %18 = vector.broadcast %17 : f32 to vector<8x64xf32>
    %19 = arith.addf %16, %18 : vector<8x64xf32>
    %c4 = arith.constant 4 : index
    %20 = memref.load %arg0[%c4] : memref<24xf32, #tpu.memory_space<smem>>
    %21 = vector.broadcast %20 : f32 to vector<8x64xf32>
    %22 = arith.mulf %21, %1 : vector<8x64xf32>
    %c5 = arith.constant 5 : index
    %23 = memref.load %arg0[%c5] : memref<24xf32, #tpu.memory_space<smem>>
    %24 = vector.broadcast %23 : f32 to vector<8x64xf32>
    %25 = arith.mulf %24, %3 : vector<8x64xf32>
    %26 = arith.addf %22, %25 : vector<8x64xf32>
    %c6 = arith.constant 6 : index
    %27 = memref.load %arg0[%c6] : memref<24xf32, #tpu.memory_space<smem>>
    %28 = vector.broadcast %27 : f32 to vector<8x64xf32>
    %29 = arith.mulf %28, %5 : vector<8x64xf32>
    %30 = arith.addf %26, %29 : vector<8x64xf32>
    %c7 = arith.constant 7 : index
    %31 = memref.load %arg0[%c7] : memref<24xf32, #tpu.memory_space<smem>>
    %32 = vector.broadcast %31 : f32 to vector<8x64xf32>
    %33 = arith.addf %30, %32 : vector<8x64xf32>
    %c8 = arith.constant 8 : index
    %34 = memref.load %arg0[%c8] : memref<24xf32, #tpu.memory_space<smem>>
    %35 = vector.broadcast %34 : f32 to vector<8x64xf32>
    %36 = arith.mulf %35, %1 : vector<8x64xf32>
    %c9 = arith.constant 9 : index
    %37 = memref.load %arg0[%c9] : memref<24xf32, #tpu.memory_space<smem>>
    %38 = vector.broadcast %37 : f32 to vector<8x64xf32>
    %39 = arith.mulf %38, %3 : vector<8x64xf32>
    %40 = arith.addf %36, %39 : vector<8x64xf32>
    %c10 = arith.constant 10 : index
    %41 = memref.load %arg0[%c10] : memref<24xf32, #tpu.memory_space<smem>>
    %42 = vector.broadcast %41 : f32 to vector<8x64xf32>
    %43 = arith.mulf %42, %5 : vector<8x64xf32>
    %44 = arith.addf %40, %43 : vector<8x64xf32>
    %c11 = arith.constant 11 : index
    %45 = memref.load %arg0[%c11] : memref<24xf32, #tpu.memory_space<smem>>
    %46 = vector.broadcast %45 : f32 to vector<8x64xf32>
    %47 = arith.addf %44, %46 : vector<8x64xf32>
    %cst = arith.constant 0.000000e+00 : f32
    %48 = vector.broadcast %cst : f32 to vector<8x64xf32>
    %49 = arith.cmpf ogt, %47, %48 : vector<8x64xf32>
    %cst_9 = arith.constant 1.000000e+00 : f32
    %50 = vector.broadcast %cst_9 : f32 to vector<8x64xf32>
    %51 = arith.select %49, %47, %50 : vector<8x64xi1>, vector<8x64xf32>
    %52 = tpu.reciprocal %51 : vector<8x64xf32> -> vector<8x64xf32>
    %53 = arith.mulf %19, %52 : vector<8x64xf32>
    %cst_10 = arith.constant 0.1171875 : f32
    %54 = vector.broadcast %cst_10 : f32 to vector<8x64xf32>
    %55 = arith.mulf %53, %54 : vector<8x64xf32>
    %56 = arith.mulf %33, %52 : vector<8x64xf32>
    %cst_11 = arith.constant 0.1171875 : f32
    %57 = vector.broadcast %cst_11 : f32 to vector<8x64xf32>
    %58 = arith.mulf %56, %57 : vector<8x64xf32>
    %cst_12 = arith.constant 0.000000e+00 : f32
    %59 = vector.broadcast %cst_12 : f32 to vector<8x64xf32>
    %60 = arith.cmpf oge, %55, %59 : vector<8x64xf32>
    %cst_13 = arith.constant 1.500000e+01 : f32
    %61 = vector.broadcast %cst_13 : f32 to vector<8x64xf32>
    %62 = arith.cmpf ole, %55, %61 : vector<8x64xf32>
    %63 = arith.andi %60, %62 : vector<8x64xi1>
    %cst_14 = arith.constant 0.000000e+00 : f32
    %64 = vector.broadcast %cst_14 : f32 to vector<8x64xf32>
    %65 = arith.cmpf oge, %58, %64 : vector<8x64xf32>
    %66 = arith.andi %63, %65 : vector<8x64xi1>
    %cst_15 = arith.constant 1.500000e+01 : f32
    %67 = vector.broadcast %cst_15 : f32 to vector<8x64xf32>
    %68 = arith.cmpf ole, %58, %67 : vector<8x64xf32>
    %69 = arith.andi %66, %68 : vector<8x64xi1>
    %70 = arith.andi %69, %49 : vector<8x64xi1>
    %cst_16 = arith.constant 1.000000e+00 : f32
    %cst_17 = arith.constant 0.000000e+00 : f32
    %71 = vector.broadcast %cst_16 : f32 to vector<8x64xf32>
    %72 = vector.broadcast %cst_17 : f32 to vector<8x64xf32>
    %73 = arith.select %70, %71, %72 : vector<8x64xi1>, vector<8x64xf32>
    %cst_18 = arith.constant dense<0.000000e+00> : vector<64xf32>
    %74 = vector.multi_reduction <add>, %73, %cst_18 [0] : vector<8x64xf32> to vector<64xf32>
    %75 = vector.shape_cast %74 : vector<64xf32> to vector<1x64xf32>
    %cst_19 = arith.constant 9.99999993E-9 : f32
    %76 = vector.broadcast %cst_19 : f32 to vector<1x64xf32>
    %77 = arith.addf %75, %76 : vector<1x64xf32>
    %78 = tpu.reciprocal %77 : vector<1x64xf32> -> vector<1x64xf32>
    %79 = vector.broadcast %78 : vector<1x64xf32> to vector<8x64xf32>
    %80 = arith.mulf %73, %79 : vector<8x64xf32>
    %c0_20 = arith.constant 0 : index
    %c0_21 = arith.constant 0 : index
    %c0_22 = arith.constant 0 : index
    %81 = vector.load %arg2[%c0_20, %c0_21, %c0_22] : memref<2x8x64xf32, #tpu.memory_space<vmem>>, vector<1x8x64xf32>
    %82 = vector.shape_cast %81 : vector<1x8x64xf32> to vector<8x64xf32>
    %83 = vector.shape_cast %80 : vector<8x64xf32> to vector<1x8x64xf32>
    tpu.vector_store %arg2[%c0_20, %c0_21, %c0_22], %83 {strides = array<i32>} : memref<2x8x64xf32, #tpu.memory_space<vmem>>, vector<1x8x64xf32>,
    %c12 = arith.constant 12 : index
    %84 = memref.load %arg0[%c12] : memref<24xf32, #tpu.memory_space<smem>>
    %85 = vector.broadcast %84 : f32 to vector<8x64xf32>
    %86 = arith.mulf %85, %1 : vector<8x64xf32>
    %c13 = arith.constant 13 : index
    %87 = memref.load %arg0[%c13] : memref<24xf32, #tpu.memory_space<smem>>
    %88 = vector.broadcast %87 : f32 to vector<8x64xf32>
    %89 = arith.mulf %88, %3 : vector<8x64xf32>
    %90 = arith.addf %86, %89 : vector<8x64xf32>
    %c14 = arith.constant 14 : index
    %91 = memref.load %arg0[%c14] : memref<24xf32, #tpu.memory_space<smem>>
    %92 = vector.broadcast %91 : f32 to vector<8x64xf32>
    %93 = arith.mulf %92, %5 : vector<8x64xf32>
    %94 = arith.addf %90, %93 : vector<8x64xf32>
    %c15 = arith.constant 15 : index
    %95 = memref.load %arg0[%c15] : memref<24xf32, #tpu.memory_space<smem>>
    %96 = vector.broadcast %95 : f32 to vector<8x64xf32>
    %97 = arith.addf %94, %96 : vector<8x64xf32>
    %c16 = arith.constant 16 : index
    %98 = memref.load %arg0[%c16] : memref<24xf32, #tpu.memory_space<smem>>
    %99 = vector.broadcast %98 : f32 to vector<8x64xf32>
    %100 = arith.mulf %99, %1 : vector<8x64xf32>
    %c17 = arith.constant 17 : index
    %101 = memref.load %arg0[%c17] : memref<24xf32, #tpu.memory_space<smem>>
    %102 = vector.broadcast %101 : f32 to vector<8x64xf32>
    %103 = arith.mulf %102, %3 : vector<8x64xf32>
    %104 = arith.addf %100, %103 : vector<8x64xf32>
    %c18 = arith.constant 18 : index
    %105 = memref.load %arg0[%c18] : memref<24xf32, #tpu.memory_space<smem>>
    %106 = vector.broadcast %105 : f32 to vector<8x64xf32>
    %107 = arith.mulf %106, %5 : vector<8x64xf32>
    %108 = arith.addf %104, %107 : vector<8x64xf32>
    %c19 = arith.constant 19 : index
    %109 = memref.load %arg0[%c19] : memref<24xf32, #tpu.memory_space<smem>>
    %110 = vector.broadcast %109 : f32 to vector<8x64xf32>
    %111 = arith.addf %108, %110 : vector<8x64xf32>
    %c20 = arith.constant 20 : index
    %112 = memref.load %arg0[%c20] : memref<24xf32, #tpu.memory_space<smem>>
    %113 = vector.broadcast %112 : f32 to vector<8x64xf32>
    %114 = arith.mulf %113, %1 : vector<8x64xf32>
    %c21 = arith.constant 21 : index
    %115 = memref.load %arg0[%c21] : memref<24xf32, #tpu.memory_space<smem>>
    %116 = vector.broadcast %115 : f32 to vector<8x64xf32>
    %117 = arith.mulf %116, %3 : vector<8x64xf32>
    %118 = arith.addf %114, %117 : vector<8x64xf32>
    %c22 = arith.constant 22 : index
    %119 = memref.load %arg0[%c22] : memref<24xf32, #tpu.memory_space<smem>>
    %120 = vector.broadcast %119 : f32 to vector<8x64xf32>
    %121 = arith.mulf %120, %5 : vector<8x64xf32>
    %122 = arith.addf %118, %121 : vector<8x64xf32>
    %c23 = arith.constant 23 : index
    %123 = memref.load %arg0[%c23] : memref<24xf32, #tpu.memory_space<smem>>
    %124 = vector.broadcast %123 : f32 to vector<8x64xf32>
    %125 = arith.addf %122, %124 : vector<8x64xf32>
    %cst_23 = arith.constant 0.000000e+00 : f32
    %126 = vector.broadcast %cst_23 : f32 to vector<8x64xf32>
    %127 = arith.cmpf ogt, %125, %126 : vector<8x64xf32>
    %cst_24 = arith.constant 1.000000e+00 : f32
    %128 = vector.broadcast %cst_24 : f32 to vector<8x64xf32>
    %129 = arith.select %127, %125, %128 : vector<8x64xi1>, vector<8x64xf32>
    %130 = tpu.reciprocal %129 : vector<8x64xf32> -> vector<8x64xf32>
    %131 = arith.mulf %97, %130 : vector<8x64xf32>
    %cst_25 = arith.constant 0.1171875 : f32
    %132 = vector.broadcast %cst_25 : f32 to vector<8x64xf32>
    %133 = arith.mulf %131, %132 : vector<8x64xf32>
    %134 = arith.mulf %111, %130 : vector<8x64xf32>
    %cst_26 = arith.constant 0.1171875 : f32
    %135 = vector.broadcast %cst_26 : f32 to vector<8x64xf32>
    %136 = arith.mulf %134, %135 : vector<8x64xf32>
    %cst_27 = arith.constant 0.000000e+00 : f32
    %137 = vector.broadcast %cst_27 : f32 to vector<8x64xf32>
    %138 = arith.cmpf oge, %133, %137 : vector<8x64xf32>
    %cst_28 = arith.constant 1.500000e+01 : f32
    %139 = vector.broadcast %cst_28 : f32 to vector<8x64xf32>
    %140 = arith.cmpf ole, %133, %139 : vector<8x64xf32>
    %141 = arith.andi %138, %140 : vector<8x64xi1>
    %cst_29 = arith.constant 0.000000e+00 : f32
    %142 = vector.broadcast %cst_29 : f32 to vector<8x64xf32>
    %143 = arith.cmpf oge, %136, %142 : vector<8x64xf32>
    %144 = arith.andi %141, %143 : vector<8x64xi1>
    %cst_30 = arith.constant 1.500000e+01 : f32
    %145 = vector.broadcast %cst_30 : f32 to vector<8x64xf32>
    %146 = arith.cmpf ole, %136, %145 : vector<8x64xf32>
    %147 = arith.andi %144, %146 : vector<8x64xi1>
    %148 = arith.andi %147, %127 : vector<8x64xi1>
    %cst_31 = arith.constant 1.000000e+00 : f32
    %cst_32 = arith.constant 0.000000e+00 : f32
    %149 = vector.broadcast %cst_31 : f32 to vector<8x64xf32>
    %150 = vector.broadcast %cst_32 : f32 to vector<8x64xf32>
    %151 = arith.select %148, %149, %150 : vector<8x64xi1>, vector<8x64xf32>
    %cst_33 = arith.constant dense<0.000000e+00> : vector<64xf32>
    %152 = vector.multi_reduction <add>, %151, %cst_33 [0] : vector<8x64xf32> to vector<64xf32>
    %153 = vector.shape_cast %152 : vector<64xf32> to vector<1x64xf32>
    %cst_34 = arith.constant 9.99999993E-9 : f32
    %154 = vector.broadcast %cst_34 : f32 to vector<1x64xf32>
    %155 = arith.addf %153, %154 : vector<1x64xf32>
    %156 = tpu.reciprocal %155 : vector<1x64xf32> -> vector<1x64xf32>
    %157 = vector.broadcast %156 : vector<1x64xf32> to vector<8x64xf32>
    %158 = arith.mulf %151, %157 : vector<8x64xf32>
    %c1_35 = arith.constant 1 : index
    %c0_36 = arith.constant 0 : index
    %c0_37 = arith.constant 0 : index
    %159 = vector.load %arg2[%c1_35, %c0_36, %c0_37] : memref<2x8x64xf32, #tpu.memory_space<vmem>>, vector<1x8x64xf32>
    %160 = vector.shape_cast %159 : vector<1x8x64xf32> to vector<8x64xf32>
    %161 = vector.shape_cast %158 : vector<8x64xf32> to vector<1x8x64xf32>
    tpu.vector_store %arg2[%c1_35, %c0_36, %c0_37], %161 {strides = array<i32>} : memref<2x8x64xf32, #tpu.memory_space<vmem>>, vector<1x8x64xf32>,
    return
  }
}

</mosaic_0001>

<bundles_post_ra>
// kernel: tpu_custom_call.1
= control target key start
LH: loop header
LB: loop body
LE: loop exit
PB: predicated region body
PF: predicated region fallthrough
CT: control target
= control target key end

     0   :  { %7 = vsyncpa [#allocation5], 0  ;;  %s427_s0 = inlined_call_operand.hbm [shape: f32[24], index: 0, kind: input, shape index: {}]   ;;  %s428_s1 = inlined_call_operand.hbm [shape: f32[3,8,64], index: 1, kind: input, shape index: {}]   ;;  %s429_s2 = inlined_call_operand.hbm [shape: f32[2,8,64], index: 2, kind: output, shape index: {}]  }
   0x1   :  { %8 = vsyncpa [#allocation3], 0 }
   0x2   :  { %9 = vsyncpa [#allocation4], 0  ;;  %s237_s11 = scalar_lea.hbm %s427_s0, 16 }
   0x3   :  { %p238_p0 = scmp.ne.s32.totalorder %s427_s0, %s237_s11  ;;  %p241_p1 = scmp.lt.u32.totalorder %s237_s11, %s427_s0 }
   0x5   :  { %p243_p2 = pnand %p241_p1, %p238_p0 }
   0x7   :  { %246 = shalt.err (!%p243_p2)
}
   0x8   :  { %s297_s16 = smov [#allocation2]   ;;  %s298_s19 = smov [#allocation6]  }
   0x9   :  { %17 = dma.hbm_to_smem %s427_s0, 16, %s297_s16, [#allocation5]  }
   0xa   :  { %s23_s20 = sshll.u32 %s298_s19, 4  ;;  %s247_s23 = scalar_lea.hbm %s428_s1, 384  ;;  %s24_s20 = int_to_ptr.vmem [resolvable:$true] %s23_s20 }
   0xb   :  { %p248_p3 = scmp.ne.s32.totalorder %s428_s1, %s247_s23  ;;  %p251_p4 = scmp.lt.u32.totalorder %s247_s23, %s428_s1 }
   0xd   :  { %p253_p5 = pnand %p251_p4, %p248_p3 }
   0xf   :  { %256 = shalt.err (!%p253_p5)
}
  0x10   :  { %s257_s28 = scalar_lea.vmem %s24_s20, 384  ;;  %p262_p7 = scmp.lt.s32.totalorder %s24_s20, %s24_s20 }
  0x11   :  { %p258_p6 = scmp.ne.s32.totalorder %s24_s20, %s257_s28  ;;  %p263_p8 = scmp.lt.s32.totalorder %s257_s28, %s257_s28 }
  0x13   :  { %p264_p9 = por %p263_p8, %p262_p7 }
  0x15   :  { %p265_p10 = pnand %p264_p9, %p258_p6 }
  0x17   :  { %268 = shalt.err (!%p265_p10)
}
  0x18   :  { %s299_s0 = smov 128   ;;  %s300_s29 = smov 8  }
  0x19   :  { %29 = dma.hbm_to_vmem [thread:$0]  %s428_s1, 384, %s24_s20, [#allocation3], %s299_s0, %s299_s0, %s300_s29  }
  0x1a   :  { %291 = dma.done.wait [#allocation5], 16  }
  0x1b   :  { %292 = vsyncadd [#allocation5], 4294967280 }
  0x1c   :  { %293 = dma.done.wait [#allocation3], 384  }
  0x1d   :  { %294 = vsyncadd [#allocation3], 4294966912 }
  0x1e   :  { %36 = sfence }
  0x1f   :  { %s42_s4 = sld [smem:[#allocation2]]  ;;  %s200_s5 = sld [smem:[#allocation2 + $0x1]]  ;;  %v37_v0 = vld [vmem:[#allocation6] sm:$0xff]  ;;  %v39_v1 = vld [vmem:[#allocation6 + $0x8] sm:$0xff]  ;;  %v355_v2 = vld [vmem:[#allocation6 + $0x10] sm:$0xff]  ;;  %vm100_vm9 = vcmask 523264  }
  0x20   :  { %s345_s6 = sld [smem:[#allocation2 + $0x2]]  ;;  %s207_s7 = sld [smem:[#allocation2 + $0x8]] }
  0x21   :  { %s208_s8 = sld [smem:[#allocation2 + $0x9]]  ;;  %s209_s9 = sld [smem:[#allocation2 + $0xa]] }
  0x22   :  { %s347_s10 = sld [smem:[#allocation2 + $0x4]]  ;;  %s349_s11 = sld [smem:[#allocation2 + $0x5]] }
  0x23   :  { %s351_s12 = sld [smem:[#allocation2 + $0x6]]  ;;  %s353_s13 = sld [smem:[#allocation2 + $0xb]] }
  0x24   :  { %s357_s1 = sld [smem:[#allocation2 + $0xc]]  ;;  %s361_s15 = sld [smem:[#allocation2 + $0x15]] }
  0x25   :  { %v43_v3 = vstv %s42_s4  ;;  %s359_s14 = sld [smem:[#allocation2 + $0x14]]  ;;  %v46_v4 = vstv %s200_s5  ;;  %s363_s16 = sld [smem:[#allocation2 + $0x16]] }
  0x26   :  { %v71_v5 = vstv %s207_s7  ;;  %s365_s17 = sld [smem:[#allocation2 + $0xd]]  ;;  %v44_v10 = vmul.f32 %v43_v3, %v37_v0  ;;  %v50_v11 = vstv %s345_s6  ;;  %s369_s18 = sld [smem:[#allocation2 + $0x10]]  ;;  %v47_v13 = vmul.f32 %v46_v4, %v39_v1 }
  0x27   :  { %v74_v6 = vstv %s208_s8  ;;  %v78_v7 = vstv %s209_s9  ;;  %v72_v8 = vmul.f32 %v71_v5, %v37_v0  ;;  %s371_s19 = sld [smem:[#allocation2 + $0x11]]  ;;  %s377_s20 = sld [smem:[#allocation2 + $0x17]]  ;;  %v51_v20 = vmul.f32 %v50_v11, %v355_v2 }
  0x28   :  { %v75_v9 = vmul.f32 %v74_v6, %v39_v1  ;;  %v79_v12 = vmul.f32 %v78_v7, %v355_v2  ;;  %v57_v14 = vstv %s347_s10  ;;  %v60_v15 = vstv %s349_s11  ;;  %s379_s21 = sld [smem:[#allocation2 + $0xe]]  ;;  %s382_s22 = sld [smem:[#allocation2 + $0x12]] }
  0x29   :  { %v64_v17 = vstv %s351_s12  ;;  %v82_v18 = vstv %s353_s13  ;;  %v58_v21 = vmul.f32 %v57_v14, %v37_v0  ;;  %v61_v22 = vmul.f32 %v60_v15, %v39_v1  ;;  %s384_s23 = sld [smem:[#allocation2 + $0x3]]  ;;  %s387_s24 = sld [smem:[#allocation2 + $0x7]] }
  0x2a   :  { %v76_v16 = vadd.f32 %v75_v9, %v72_v8  ;;  %v48_v23 = vadd.f32 %v47_v13, %v44_v10  ;;  %v65_v24 = vmul.f32 %v64_v17, %v355_v2  ;;  %v113_v27 = vstv %s357_s1  ;;  %s214_s25 = sld [smem:[#allocation2 + $0xf]]  ;;  %s218_s26 = sld [smem:[#allocation2 + $0x13]] }
  0x2b   :  { %v141_v26 = vstv %s359_s14  ;;  %v144_v29 = vstv %s361_s15  ;;  %v148_v30 = vstv %s363_s16  ;;  %v62_v34 = vadd.f32 %v61_v22, %v58_v21  ;;  %s302_s27 = smov [#allocation7]  }
  0x2c   :  { %v80_v19 = vadd.f32 %v79_v12, %v76_v16  ;;  %v142_v28 = vmul.f32 %v141_v26, %v37_v0  ;;  %v116_v31 = vstv %s365_s17  ;;  %v145_v32 = vmul.f32 %v144_v29, %v39_v1  ;;  %s187_s28 = sshll.u32 %s302_s27, 4  ;;  %s188_s28 = int_to_ptr.vmem [resolvable:$true] %s187_s28 }
  0x2d   :  { %v149_v33 = vmul.f32 %v148_v30, %v355_v2  ;;  %v127_v36 = vstv %s369_s18  ;;  %v130_v37 = vstv %s371_s19  ;;  %v114_v39 = vmul.f32 %v113_v27, %v37_v0  ;;  %s269_s30 = scalar_lea.vmem %s188_s28, 256  ;;  %p274_p12 = scmp.lt.s32.totalorder %s188_s28, %s188_s28 }
  0x2e   :  { %v83_v25 = vadd.f32 %v82_v18, %v80_v19  ;;  %v146_v38 = vadd.f32 %v145_v32, %v142_v28  ;;  %v117_v40 = vmul.f32 %v116_v31, %v39_v1  ;;  %v152_v41 = vstv %s377_s20  ;;  %p270_p11 = scmp.ne.s32.totalorder %s188_s28, %s269_s30  ;;  %p275_p13 = scmp.lt.s32.totalorder %s269_s30, %s269_s30 }
  0x2f   :  { %v120_v42 = vstv %s379_s21  ;;  %v128_v43 = vmul.f32 %v127_v36, %v37_v0  ;;  %v131_v44 = vmul.f32 %v130_v37, %v39_v1  ;;  %v52_v46 = vadd.f32 %v51_v20, %v48_v23 }
  0x30   :  { %vm84_vm0 = vcmp.gt.f32.partialorder %v83_v25, 0.0  ;;  %v150_v45 = vadd.f32 %v149_v33, %v146_v38  ;;  %v66_v47 = vadd.f32 %v65_v24, %v62_v34  ;;  %v134_v48 = vstv %s382_s22  ;;  %p276_p0 = por %p275_p13, %p274_p12 }
  0x31   :  { %v85_v35 = vsel %vm84_vm0, %v83_v25, 1.0  ;;  %v54_v49 = vstv %s384_s23  ;;  %v68_v50 = vstv %s387_s24  ;;  %v121_v52 = vmul.f32 %v120_v42, %v355_v2 }
  0x32   :  { %229 = vrcp.f32 %v85_v35  ;;  %v153_v51 = vadd.f32 %v152_v41, %v150_v45  ;;  %v118_v53 = vadd.f32 %v117_v40, %v114_v39  ;;  %v132_v54 = vadd.f32 %v131_v44, %v128_v43  ;;  %p277_p1 = pnand %p276_p0, %p270_p11 }
  0x33   :  { %v135_v55 = vmul.f32 %v134_v48, %v355_v2  ;;  %v55_v56 = vadd.f32 %v54_v49, %v52_v46  ;;  %v69_v57 = vadd.f32 %v68_v50, %v66_v47  ;;  %v124_v0 = vstv %s214_s25 }
  0x34   :  { %vm154_vm1 = vcmp.gt.f32.partialorder %v153_v51, 0.0  ;;  %v122_v60 = vadd.f32 %v121_v52, %v118_v53  ;;  %v138_v1 = vstv %s218_s26  ;;  %v301_v9 = vmov 0.0  }
  0x35   :  { %v155_v58 = vsel %vm154_vm1, %v153_v51, 1.0  ;;  %v136_v61 = vadd.f32 %v135_v55, %v132_v54 }
  0x36   :  { %231 = vrcp.f32 %v155_v58  ;;  %v125_v5 = vadd.f32 %v124_v0, %v122_v60 }
  0x37   :  { %v139_v6 = vadd.f32 %v138_v1, %v136_v61 }
  0x3c   :  { %v230_v59 = vpop.eup %229 }
  0x3d   :  { %v87_v62 = vmul.f32 %v230_v59, %v55_v56  ;;  %v89_v63 = vmul.f32 %v230_v59, %v69_v57 }
  0x3f   :  { %v88_v3 = vmul.f32 0.1171875, %v87_v62  ;;  %v90_v4 = vmul.f32 0.1171875, %v89_v63 }
  0x40   :  { %v232_v2 = vpop.eup %231 }
  0x41   :  { %vm91_vm2 = vcmp.ge.f32.partialorder %v88_v3, 0.0  ;;  %vm92_vm3 = vcmp.le.f32.partialorder %v88_v3, 15.0  ;;  %vm94_vm4 = vcmp.ge.f32.partialorder %v90_v4, 0.0  ;;  %vm96_vm5 = vcmp.le.f32.partialorder %v90_v4, 15.0 }
  0x42   :  { %vm93_vm6 = vmand %vm91_vm2, %vm92_vm3  ;;  %v157_v7 = vmul.f32 %v232_v2, %v125_v5  ;;  %v159_v8 = vmul.f32 %v232_v2, %v139_v6 }
  0x43   :  { %vm95_vm7 = vmand %vm93_vm6, %vm94_vm4 }
  0x44   :  { %vm97_vm8 = vmand %vm95_vm7, %vm96_vm5  ;;  %v158_v12 = vmul.f32 0.1171875, %v157_v7  ;;  %v160_v13 = vmul.f32 0.1171875, %v159_v8 }
  0x45   :  { %vm98_vm10 = vmand %vm97_vm8, %vm84_vm0 }
  0x46   :  { %v99_v10 = vsel %vm98_vm10, 1.0, %v301_v9  ;;  %vm161_vm11 = vcmp.ge.f32.partialorder %v158_v12, 0.0  ;;  %vm162_vm12 = vcmp.le.f32.partialorder %v158_v12, 15.0  ;;  %vm164_vm13 = vcmp.ge.f32.partialorder %v160_v13, 0.0 }
  0x47   :  { %v101_v11 = vsel %vm100_vm9, %v99_v10, 0.0  ;;  %vm166_vm14 = vcmp.le.f32.partialorder %v160_v13, 15.0  ;;  %vm163_vm15 = vmand %vm161_vm11, %vm162_vm12 }
  0x48   :  { %v102_v14 = vrot.slane %v101_v11, 4  ;;  %vm165_vm2 = vmand %vm163_vm15, %vm164_vm13 }
  0x49   :  { %vm167_vm3 = vmand %vm165_vm2, %vm166_vm14 }
  0x4a   :  { %v103_v15 = vadd.f32 %v102_v14, %v101_v11  ;;  %vm168_vm0 = vmand %vm167_vm3, %vm154_vm1 }
  0x4b   :  { %v169_v18 = vsel %vm168_vm0, 1.0, %v301_v9 }
  0x4c   :  { %v104_v16 = vrot.slane %v103_v15, 2  ;;  %v170_v19 = vsel %vm100_vm9, %v169_v18, 0.0 }
  0x4d   :  { %v171_v21 = vrot.slane %v170_v19, 4 }
  0x4e   :  { %v105_v17 = vadd.f32 %v104_v16, %v103_v15 }
  0x4f   :  { %v172_v23 = vadd.f32 %v171_v21, %v170_v19 }
  0x50   :  { %v106_v20 = vrot.slane %v105_v17, 1 }
  0x51   :  { %v173_v25 = vrot.slane %v172_v23, 2 }
  0x52   :  { %v107_v22 = vadd.f32 %v106_v20, %v105_v17 }
  0x53   :  { %v174_v26 = vadd.f32 %v173_v25, %v172_v23 }
  0x54   :  { %v108_v24 = vadd.f32 1e-08, %v107_v22 }
  0x55   :  { %v175_v27 = vrot.slane %v174_v26, 1 }
  0x56   :  { %233 = vrcp.f32 %v108_v24 }
  0x57   :  { %v176_v28 = vadd.f32 %v175_v27, %v174_v26 }
  0x59   :  { %v177_v29 = vadd.f32 1e-08, %v176_v28 }
  0x5b   :  { %235 = vrcp.f32 %v177_v29 }
  0x60   :  { %v234_v30 = vpop.eup %233 }
  0x61   :  { %v110_v31 = vmul.f32 %v234_v30, %v99_v10 }
  0x63   :  { %111 = vst.msk [vmem:[#allocation7] sm:$0xff] %vm100_vm9, %v110_v31 }
  0x65   :  { %v236_v32 = vpop.eup %235 }
  0x66   :  { %v179_v33 = vmul.f32 %v236_v32, %v169_v18 }
  0x68   :  { %181 = vst.msk [vmem:[#allocation7 + $0x8] sm:$0xff] %vm100_vm9, %v179_v33 }
  0x69   :  { %280 = shalt.err (!%p277_p1)
}
  0x6a   :  { %s281_s5 = scalar_lea.hbm %s429_s2, 256 }
  0x6b   :  { %p282_p2 = scmp.ne.s32.totalorder %s429_s2, %s281_s5  ;;  %p285_p3 = scmp.lt.u32.totalorder %s281_s5, %s429_s2 }
  0x6d   :  { %p287_p4 = pnand %p285_p3, %p282_p2 }
  0x6f   :  { %290 = shalt.err (!%p287_p4)
}
  0x70   :  { %193 = dma.vmem_to_hbm [thread:$0]  %s188_s28, 256, %s429_s2, [#allocation4], %s299_s0, %s299_s0, %s300_s29  }
  0x71   :  { %295 = dma.done.wait [#allocation4], 256  }
  0x72   :  { %296 = vsyncadd [#allocation4], 4294967040 }
  0x73   :  { %197 = vsyncpa [#allocation3], 1 }
  0x74   :  { %198 = vsyncpa [#allocation4], 1 }
  0x75   :  { %199 = vsyncpa [#allocation5], 1 }

</bundles_post_ra>
